<compile_context>
chip_gen: v6e
topology: v6e:2x2x1
jax: 0.10.0
libtpu: 0.0.40
codegen_flags: <defaults>
</compile_context>

<pallas_src>
import jax
import jax.numpy as jnp
from jax import lax
from jax.experimental import pallas as pl
from jax.experimental.pallas import tpu as pltpu

_LANES = 128
_SUBLANES = 8
_ACC_SPLIT = 8                                   # independent (8,128) accumulators per block
_CHUNK_ROWS = _ACC_SPLIT * _SUBLANES * 4         # 256 rows per in-kernel loop step
_BLOCK_BYTES_PER_INPUT = 4 * 1024 * 1024         # ~4 MiB of each input per grid step
_MIN_KERNEL_BYTES = 1 * 1024 * 1024              # below this (both inputs combined) plain jnp wins
_VMEM_LIMIT_BYTES = 40 * 1024 * 1024             # 2 inputs x 2 bufs x 4 MiB = 16 MiB + headroom
                                                 # (fits v5e/v6e 128 MiB and v7x 64 MiB physical VMEM)


def _partial_sq_diff_kernel(x_ref, t_ref, o_ref):
    """Per grid step: fold a (block_rows, 128) slab of (x-t)^2 into an
    (_ACC_SPLIT, 8, 128) partial sum, using only leading-axis (VPU) adds."""
    n_chunks = x_ref.shape[0] // _CHUNK_ROWS

    def body(j, acc):
        i0 = pl.multiple_of(j * _CHUNK_ROWS, _CHUNK_ROWS)
        # Stream in native dtype; upcast in-register.
        xc = x_ref[pl.ds(i0, _CHUNK_ROWS), :].astype(jnp.float32)
        tc = t_ref[pl.ds(i0, _CHUNK_ROWS), :].astype(jnp.float32)
        d = xc - tc
        sq = d * d
        # (256,128) -> (4, 8, 8, 128): tile-aligned split of the leading axis;
        # the reduce over axis 0 is plain per-lane VPU adds (no cross-lane work).
        return acc + jnp.sum(sq.reshape(-1, _ACC_SPLIT, _SUBLANES, _LANES), axis=0)

    acc0 = jnp.zeros((_ACC_SPLIT, _SUBLANES, _LANES), jnp.float32)
    o_ref[0] = lax.fori_loop(0, n_chunks, body, acc0)


def _partial_sq_diff_sums(x2d, t2d, block_rows):
    rows, lanes = x2d.shape
    assert lanes == _LANES
    assert block_rows % _CHUNK_ROWS == 0 and rows % block_rows == 0
    n_blocks = rows // block_rows
    in_bytes = rows * _LANES * (x2d.dtype.itemsize + t2d.dtype.itemsize)
    out_bytes = n_blocks * _ACC_SPLIT * _SUBLANES * _LANES * 4
    return pl.pallas_call(
        _partial_sq_diff_kernel,
        out_shape=jax.ShapeDtypeStruct(
            (n_blocks, _ACC_SPLIT, _SUBLANES, _LANES), jnp.float32),
        grid_spec=pltpu.PrefetchScalarGridSpec(
            num_scalar_prefetch=0,
            grid=(n_blocks,),
            in_specs=[
                pl.BlockSpec((block_rows, _LANES), lambda i: (i, 0)),
                pl.BlockSpec((block_rows, _LANES), lambda i: (i, 0)),
            ],
            out_specs=pl.BlockSpec(
                (1, _ACC_SPLIT, _SUBLANES, _LANES), lambda i: (i, 0, 0, 0)),
        ),
        compiler_params=pltpu.CompilerParams(
            dimension_semantics=("parallel",),
            vmem_limit_bytes=_VMEM_LIMIT_BYTES,
        ),
        cost_estimate=pl.CostEstimate(
            flops=3 * rows * _LANES,
            transcendentals=0,
            bytes_accessed=in_bytes + out_bytes,
        ),
    )(x2d, t2d)


def mse_loss_pallas(x, target):
    """mean((x - target)^2) over all elements, hot path in a Pallas kernel."""
    assert x.shape == target.shape
    n = x.size
    if n == 0:
        return jnp.float32(0.0)

    xf = jnp.ravel(x)
    tf = jnp.ravel(target)

    total_bytes = n * (x.dtype.itemsize + target.dtype.itemsize)
    full_rows = n // _LANES

    # Dtype-aware block sizing: fixed ~4 MiB-per-input byte budget per grid step,
    # rounded down to a multiple of 256 rows (covers packed-sublane multiples
    # 8/16/32 for f32/bf16/int8 and the in-kernel 256-row chunking).
    row_bytes = _LANES * (x.dtype.itemsize + target.dtype.itemsize)
    rows_budget = (2 * _BLOCK_BYTES_PER_INPUT) // row_bytes
    block_rows = (min(rows_budget, full_rows) // _CHUNK_ROWS) * _CHUNK_ROWS

    if total_bytes < _MIN_KERNEL_BYTES or block_rows == 0:
        # A couple of tiny grid steps can't amortize pallas_call launch/step
        # overhead; a single fused XLA subtract-square-reduce wins outright.
        d = xf.astype(jnp.float32) - tf.astype(jnp.float32)
        return jnp.sum(d * d) / jnp.float32(n)

    main_rows = (full_rows // block_rows) * block_rows
    main = main_rows * _LANES

    x2d = xf[:main].reshape(main_rows, _LANES)
    t2d = tf[:main].reshape(main_rows, _LANES)
    partials = _partial_sq_diff_sums(x2d, t2d, block_rows)
    total = jnp.sum(partials)

    if main < n:
        # Small ragged tail handled with plain jnp instead of concatenating
        # zero padding onto full copies of x and target.
        dt = xf[main:].astype(jnp.float32) - tf[main:].astype(jnp.float32)
        total = total + jnp.sum(dt * dt)

    return total / jnp.float32(n)


class ContentLoss:
    """JAX/Pallas port of the PyTorch ContentLoss module (pass-through forward)."""

    def __init__(self, target_feature, weight, mode=None):
        self.target = jnp.zeros((0,), jnp.float32)
        self.weight = weight
        self.mode = mode
        self.loss = jnp.float32(0.0)
        if self.mode == "capture":
            self.target = jax.lax.stop_gradient(target_feature)

    def forward(self, x):
        if self.mode == "loss":
            self.loss = mse_loss_pallas(x, self.target) * self.weight
        return x  # module is a pass-through, like the PyTorch original

    __call__ = forward


if __name__ == "__main__":
    key = jax.random.PRNGKey(0)
    k1, k2, k3, k4, k5, k6 = jax.random.split(key, 6)
    weight = 0.5

    # 1) Small NCHW feature map (2,4,16,16): below the kernel threshold, takes
    #    the fused-jnp path inside mse_loss_pallas (correctness still checked).
    x_small = jax.random.normal(k1, (2, 4, 16, 16), dtype=jnp.float32)
    t_small = jax.random.normal(k2, (2, 4, 16, 16), dtype=jnp.float32)
    cl_small = ContentLoss(t_small, weight, mode="capture")
    cl_small.mode = "loss"
    out_small = jax.block_until_ready(cl_small(x_small))
    ref_small = jnp.mean((x_small - t_small) ** 2) * weight
    assert out_small.shape == x_small.shape
    assert jnp.allclose(cl_small.loss, ref_small, rtol=1e-5, atol=1e-6)

    # 2) Larger feature map (2,32,64,64): exercises the Pallas kernel path.
    x_big = jax.random.normal(k3, (2, 32, 64, 64), dtype=jnp.float32)
    t_big = jax.random.normal(k4, (2, 32, 64, 64), dtype=jnp.float32)
    cl_big = ContentLoss(t_big, weight, mode="capture")
    cl_big.mode = "loss"
    out_big = jax.block_until_ready(cl_big(x_big))
    loss_big = jax.block_until_ready(cl_big.loss)
    ref_big = jnp.mean((x_big - t_big) ** 2) * weight
    assert out_big.shape == x_big.shape
    assert jnp.allclose(loss_big, ref_big, rtol=1e-5, atol=1e-6), (loss_big, ref_big)

    # 3) Kernel path with a ragged element count (exercises the jnp tail).
    x_rag = jax.random.normal(k5, (1, 300, 33, 33), dtype=jnp.float32)
    t_rag = jax.random.normal(k6, (1, 300, 33, 33), dtype=jnp.float32)
    loss_rag = jax.block_until_ready(mse_loss_pallas(x_rag, t_rag))
    ref_rag = jnp.mean((x_rag - t_rag) ** 2)
    assert jnp.allclose(loss_rag, ref_rag, rtol=1e-5, atol=1e-6), (loss_rag, ref_rag)

    # 4) bf16 streaming path (dtype-aware block sizing + in-kernel upcast).
    x_bf = x_big.astype(jnp.bfloat16)
    t_bf = t_big.astype(jnp.bfloat16)
    loss_bf = jax.block_until_ready(mse_loss_pallas(x_bf, t_bf))
    ref_bf = jnp.mean((x_bf.astype(jnp.float32) - t_bf.astype(jnp.float32)) ** 2)
    assert jnp.allclose(loss_bf, ref_bf, rtol=1e-4, atol=1e-5), (loss_bf, ref_bf)

    print("KERNEL_OK")
</pallas_src>

<mosaic_0001>
module attributes {stable_mosaic.version = 11 : i64} {
  func.func @_partial_sq_diff_kernel(%arg0: i32, %arg1: memref<2048x128xf32, #tpu.memory_space<vmem>>, %arg2: memref<2048x128xf32, #tpu.memory_space<vmem>>, %arg3: memref<1x8x8x128xf32, #tpu.memory_space<vmem>>) attributes {dimension_semantics = [#tpu.dimension_semantics<parallel>], iteration_bounds = array<i64: 1>, scalar_prefetch = 0 : i64, scratch_operands = 0 : i64, tpu.core_type = #tpu.core_type<tc>, window_params = [{transform_indices = @transform_0, window_bounds = array<i64: 2048, 128>}, {transform_indices = @transform_1, window_bounds = array<i64: 2048, 128>}, {transform_indices = @transform_2, window_bounds = array<i64: 1, 8, 8, 128>}]} {
    %cst = arith.constant 0.000000e+00 : f32
    %0 = vector.broadcast %cst : f32 to vector<8x8x128xf32>
    %c0_i32 = arith.constant 0 : i32
    %c8_i32 = arith.constant 8 : i32
    %1 = arith.addi %c0_i32, %c8_i32 : i32
    %c1_i32 = arith.constant 1 : i32
    %2 = scf.for %arg4 = %c0_i32 to %1 step %c1_i32 iter_args(%arg5 = %0) -> (vector<8x8x128xf32>)  : i32 {
      %c256_i32 = arith.constant 256 : i32
      %6 = arith.muli %arg4, %c256_i32 : i32
      %7 = tpu.assume_multiple %6, 256 : i32
      %8 = arith.index_cast %7 : i32 to index
      %c0_4 = arith.constant 0 : index
      %9 = vector.load %arg1[%8, %c0_4] : memref<2048x128xf32, #tpu.memory_space<vmem>>, vector<256x128xf32>
      %10 = arith.index_cast %7 : i32 to index
      %c0_5 = arith.constant 0 : index
      %11 = vector.load %arg2[%10, %c0_5] : memref<2048x128xf32, #tpu.memory_space<vmem>>, vector<256x128xf32>
      %12 = arith.subf %9, %11 : vector<256x128xf32>
      %13 = arith.mulf %12, %12 : vector<256x128xf32>
      %14 = vector.shape_cast %13 : vector<256x128xf32> to vector<4x8x8x128xf32>
      %cst_6 = arith.constant dense<0.000000e+00> : vector<8x8x128xf32>
      %15 = vector.multi_reduction <add>, %14, %cst_6 [0] : vector<4x8x8x128xf32> to vector<8x8x128xf32>
      %16 = arith.addf %arg5, %15 : vector<8x8x128xf32>
      scf.yield %16 : vector<8x8x128xf32>
    }
    %c8_i32_0 = arith.constant 8 : i32
    %c0 = arith.constant 0 : index
    %c0_1 = arith.constant 0 : index
    %c0_2 = arith.constant 0 : index
    %c0_3 = arith.constant 0 : index
    %3 = vector.load %arg3[%c0, %c0_1, %c0_2, %c0_3] : memref<1x8x8x128xf32, #tpu.memory_space<vmem>>, vector<1x8x8x128xf32>
    %4 = vector.shape_cast %3 : vector<1x8x8x128xf32> to vector<8x8x128xf32>
    %5 = vector.shape_cast %2 : vector<8x8x128xf32> to vector<1x8x8x128xf32>
    tpu.vector_store %arg3[%c0, %c0_1, %c0_2, %c0_3], %5 {strides = array<i32>} : memref<1x8x8x128xf32, #tpu.memory_space<vmem>>, vector<1x8x8x128xf32>,
    return
  }
  func.func @transform_0(%arg0: i32) -> (i32, i32) {
    %c0_i32 = arith.constant 0 : i32
    %c0_i32_0 = arith.constant 0 : i32
    return %arg0, %c0_i32 : i32, i32
  }
  func.func @transform_1(%arg0: i32) -> (i32, i32) {
    %c0_i32 = arith.constant 0 : i32
    %c0_i32_0 = arith.constant 0 : i32
    return %arg0, %c0_i32 : i32, i32
  }
  func.func @transform_2(%arg0: i32) -> (i32, i32, i32, i32) {
    %c0_i32 = arith.constant 0 : i32
    %c0_i32_0 = arith.constant 0 : i32
    %c0_i32_1 = arith.constant 0 : i32
    %c0_i32_2 = arith.constant 0 : i32
    return %arg0, %c0_i32, %c0_i32_0, %c0_i32_1 : i32, i32, i32, i32
  }
}

</mosaic_0001>

<bundles_post_ra>
// kernel: tpu_custom_call.1
= control target key start
LH: loop header
LB: loop body
LE: loop exit
PB: predicated region body
PF: predicated region fallthrough
CT: control target
= control target key end

     0   :  { %7 = vsyncpa [#allocation3], 0  ;;  %s680_s0 = inlined_call_operand.hbm [shape: f32[2048,128], index: 0, kind: input, shape index: {}]   ;;  %s681_s1 = inlined_call_operand.hbm [shape: f32[2048,128], index: 1, kind: input, shape index: {}]   ;;  %s682_s2 = inlined_call_operand.hbm [shape: f32[1,8,8,128], index: 2, kind: output, shape index: {}]  }
   0x1   :  { %8 = vsyncpa [#allocation6], 0 }
   0x2   :  { %9 = vsyncpa [#allocation4], 0  ;;  %s492_s9 = smov [#allocation2]  }
   0x3   :  { %s15_s10 = sshll.u32 %s492_s9, 4  ;;  %s16_s10 = int_to_ptr.vmem [resolvable:$true] %s15_s10 }
   0x4   :  { %s362_s11 = scalar_lea.vmem %s16_s10, 32768  ;;  %p367_p1 = scmp.lt.s32.totalorder %s16_s10, %s16_s10 }
   0x5   :  { %p363_p0 = scmp.ne.s32.totalorder %s16_s10, %s362_s11  ;;  %p368_p2 = scmp.lt.s32.totalorder %s362_s11, %s362_s11 }
   0x7   :  { %p369_p3 = por %p368_p2, %p367_p1 }
   0x9   :  { %p370_p4 = pnand %p369_p3, %p363_p0 }
   0xb   :  { %373 = shalt.err (!%p370_p4)
}
   0xc   :  { %s493_s12 = smov 128   ;;  %s494_s13 = smov 8  }
   0xd   :  { %21 = dma.hbm_to_vmem [thread:$0]  %s680_s0, 32768, %s16_s10, [#allocation3], %s493_s12, %s493_s12, %s494_s13  }
   0xe   :  { %s495_s16 = smov [#allocation5]  }
   0xf   :  { %s27_s17 = sshll.u32 %s495_s16, 4  ;;  %s28_s17 = int_to_ptr.vmem [resolvable:$true] %s27_s17 }
  0x10   :  { %s382_s18 = scalar_lea.vmem %s28_s17, 32768  ;;  %p387_p6 = scmp.lt.s32.totalorder %s28_s17, %s28_s17 }
  0x11   :  { %p383_p5 = scmp.ne.s32.totalorder %s28_s17, %s382_s18  ;;  %p388_p7 = scmp.lt.s32.totalorder %s382_s18, %s382_s18 }
  0x13   :  { %p389_p8 = por %p388_p7, %p387_p6 }
  0x15   :  { %p390_p9 = pnand %p389_p8, %p383_p5 }
  0x17   :  { %393 = shalt.err (!%p390_p9)
}
  0x18   :  { %33 = dma.hbm_to_vmem [thread:$0]  %s681_s1, 32768, %s28_s17, [#allocation6], %s493_s12, %s493_s12, %s494_s13  }
  0x19   :  { %450 = dma.done.wait [#allocation3], 32768  }
  0x1a   :  { %451 = vsyncadd [#allocation3], 4294934528 }
  0x1b   :  { %452 = dma.done.wait [#allocation6], 32768  }
  0x1c   :  { %453 = vsyncadd [#allocation6], 4294934528  ;;  %v524_v0 = vmov 0.0   ;;  %v526_v1 = vmov 0.0   ;;  %v528_v2 = vmov 0.0   ;;  %v530_v3 = vmov 0.0  }
  0x1d   :  { %v532_v4 = vmov 0.0   ;;  %v534_v5 = vmov 0.0   ;;  %v536_v6 = vmov 0.0   ;;  %v538_v7 = vmov 0.0   ;;  %s540_s0 = smov 0  }
  0x1e LB: > { %683 = vst [vmem:[#allocation11_spill] sm:$0xff] %v458_v0  ;;  %684 = vst [vmem:[#allocation12_spill] sm:$0xff] %v462_v1  ;;  %s276_s1 = sshll.u32 %s490_s0, 8  ;;  %s45_s0 = sadd.s32 1, %s490_s0   ;;  %s490_s0 = sphi %s540_s0, %s45_s0   ;;  %v486_v7 = vphi %v538_v7, %v694_v7   ;;  %v482_v6 = vphi %v536_v6, %v693_v6   ;;  %v478_v5 = vphi %v534_v5, %v692_v5   ;;  %v474_v4 = vphi %v532_v4, %v691_v4   ;;  %v470_v3 = vphi %v530_v3, %v690_v3   ;;  %v466_v2 = vphi %v528_v2, %v689_v2   ;;  %v462_v1 = vphi %v526_v1, %v688_v1   ;;  %v458_v0 = vphi %v524_v0, %v687_v0  }
  0x1f   : > { %s570_s21 = scalar_lea.vmem [#allocation2], %s276_s1  ;;  %s585_s22 = scalar_lea.vmem [#allocation5], %s276_s1 }
  0x20   : > { %v56_v8 = vld [vmem:[%s570_s21] sm:$0xff]  ;;  %v57_v9 = vld [vmem:[%s570_s21 + $0x8] sm:$0xff]  ;;  %v58_v10 = vld [vmem:[%s570_s21 + $0x10] sm:$0xff]  ;;  %p42_p10 = scmp.ge.s32.totalorder %s45_s0, 8  }
  0x21   : > { %v59_v11 = vld [vmem:[%s570_s21 + $0x18] sm:$0xff]  ;;  %v60_v12 = vld [vmem:[%s570_s21 + $0x20] sm:$0xff]  ;;  %v61_v13 = vld [vmem:[%s570_s21 + $0x28] sm:$0xff]  ;;  %s496_s23 = smov (%p42_p10), [#allocation7]  }
  0x22   : > { %v62_v14 = vld [vmem:[%s570_s21 + $0x30] sm:$0xff]  ;;  %v63_v15 = vld [vmem:[%s570_s21 + $0x38] sm:$0xff]  ;;  %v64_v16 = vld [vmem:[%s570_s21 + $0x40] sm:$0xff]  ;;  %s230_s24 = sshll.u32 (%p42_p10), %s496_s23, 4  ;;  %s231_s24 = int_to_ptr.vmem [resolvable:$true] %s230_s24 }
  0x23   : > { %v65_v17 = vld [vmem:[%s570_s21 + $0x48] sm:$0xff]  ;;  %v66_v18 = vld [vmem:[%s570_s21 + $0x50] sm:$0xff]  ;;  %v67_v19 = vld [vmem:[%s570_s21 + $0x58] sm:$0xff]  ;;  %s394_s25 = scalar_lea.vmem (%p42_p10), %s231_s24, 1024  ;;  %p399_p12 = scmp.lt.s32.totalorder (%p42_p10), %s231_s24, %s231_s24 }
  0x24   : > { %v68_v20 = vld [vmem:[%s570_s21 + $0x60] sm:$0xff]  ;;  %v69_v22 = vld [vmem:[%s570_s21 + $0x68] sm:$0xff]  ;;  %v70_v23 = vld [vmem:[%s570_s21 + $0x70] sm:$0xff]  ;;  %p395_p11 = scmp.ne.s32.totalorder (%p42_p10), %s231_s24, %s394_s25  ;;  %p400_p13 = scmp.lt.s32.totalorder (%p42_p10), %s394_s25, %s394_s25 }
  0x25   : > { %v89_v21 = vld [vmem:[%s585_s22] sm:$0xff]  ;;  %v71_v24 = vld [vmem:[%s570_s21 + $0x78] sm:$0xff]  ;;  %v90_v25 = vld [vmem:[%s585_s22 + $0x8] sm:$0xff] }
  0x26   : > { %v91_v26 = vld [vmem:[%s585_s22 + $0x10] sm:$0xff]  ;;  %v92_v27 = vld [vmem:[%s585_s22 + $0x18] sm:$0xff]  ;;  %v121_v28 = vsub.f32 %v56_v8, %v89_v21  ;;  %v72_v29 = vld [vmem:[%s570_s21 + $0x80] sm:$0xff]  ;;  %v122_v35 = vsub.f32 %v57_v9, %v90_v25  ;;  %p401_p0 = por (%p42_p10), %p400_p13, %p399_p12 }
  0x27   : > { %v73_v30 = vld [vmem:[%s570_s21 + $0x88] sm:$0xff]  ;;  %v74_v31 = vld [vmem:[%s570_s21 + $0x90] sm:$0xff]  ;;  %v93_v32 = vld [vmem:[%s585_s22 + $0x20] sm:$0xff]  ;;  %v123_v36 = vsub.f32 %v58_v10, %v91_v26  ;;  %v124_v37 = vsub.f32 %v59_v11, %v92_v27 }
  0x28   : > { %v94_v33 = vld [vmem:[%s585_s22 + $0x28] sm:$0xff]  ;;  %v95_v34 = vld [vmem:[%s585_s22 + $0x30] sm:$0xff]  ;;  %v75_v38 = vld [vmem:[%s570_s21 + $0x98] sm:$0xff]  ;;  %v125_v44 = vsub.f32 %v60_v12, %v93_v32  ;;  %v606_v47 = vmul.f32 %v121_v28, %v121_v28  ;;  %v614_v57 = vmul.f32 %v122_v35, %v122_v35  ;;  %p402_p1 = pnand (%p42_p10), %p401_p0, %p395_p11 }
  0x29   : > { %v76_v39 = vld [vmem:[%s570_s21 + $0xa0] sm:$0xff]  ;;  %v77_v40 = vld [vmem:[%s570_s21 + $0xa8] sm:$0xff]  ;;  %v96_v41 = vld [vmem:[%s585_s22 + $0x38] sm:$0xff]  ;;  %v126_v45 = vsub.f32 %v61_v13, %v94_v33  ;;  %v127_v46 = vsub.f32 %v62_v14, %v95_v34  ;;  %v622_v11 = vmul.f32 %v123_v36, %v123_v36  ;;  %v156_v27 = vmul.f32 %v124_v37, %v124_v37 }
  0x2a   : > { %v97_v42 = vld [vmem:[%s585_s22 + $0x40] sm:$0xff]  ;;  %v98_v43 = vld [vmem:[%s585_s22 + $0x48] sm:$0xff]  ;;  %v78_v48 = vld [vmem:[%s570_s21 + $0xb0] sm:$0xff]  ;;  %v128_v54 = vsub.f32 %v63_v15, %v96_v41  ;;  %v157_v35 = vmul.f32 %v125_v44, %v125_v44 }
  0x2b   : > { %v79_v49 = vld [vmem:[%s570_s21 + $0xb8] sm:$0xff]  ;;  %v80_v50 = vld [vmem:[%s570_s21 + $0xc0] sm:$0xff]  ;;  %v99_v51 = vld [vmem:[%s585_s22 + $0x50] sm:$0xff]  ;;  %v129_v55 = vsub.f32 %v64_v16, %v97_v42  ;;  %v130_v56 = vsub.f32 %v65_v17, %v98_v43  ;;  %v158_v42 = vmul.f32 %v126_v45, %v126_v45 }
  0x2c   : > { %v100_v52 = vld [vmem:[%s585_s22 + $0x58] sm:$0xff]  ;;  %v101_v53 = vld [vmem:[%s585_s22 + $0x60] sm:$0xff]  ;;  %v81_v58 = vld [vmem:[%s570_s21 + $0xc8] sm:$0xff]  ;;  %v131_v8 = vsub.f32 %v66_v18, %v99_v51 }
  0x2d   : > { %v82_v59 = vld [vmem:[%s570_s21 + $0xd0] sm:$0xff]  ;;  %v83_v60 = vld [vmem:[%s570_s21 + $0xd8] sm:$0xff]  ;;  %v102_v61 = vld [vmem:[%s585_s22 + $0x68] sm:$0xff]  ;;  %v132_v9 = vsub.f32 %v67_v19, %v100_v52  ;;  %v133_v10 = vsub.f32 %v68_v20, %v101_v53 }
  0x2e   : > { %v103_v62 = vld [vmem:[%s585_s22 + $0x70] sm:$0xff]  ;;  %v104_v63 = vld [vmem:[%s585_s22 + $0x78] sm:$0xff]  ;;  %v84_v12 = vld [vmem:[%s570_s21 + $0xe0] sm:$0xff]  ;;  %v134_v21 = vsub.f32 %v69_v22, %v102_v61 }
  0x2f   : > { %v85_v13 = vld [vmem:[%s570_s21 + $0xe8] sm:$0xff]  ;;  %v86_v14 = vld [vmem:[%s570_s21 + $0xf0] sm:$0xff]  ;;  %v105_v15 = vld [vmem:[%s585_s22 + $0x80] sm:$0xff]  ;;  %v135_v25 = vsub.f32 %v70_v23, %v103_v62  ;;  %v136_v26 = vsub.f32 %v71_v24, %v104_v63  ;;  %v164_v1 = vmul.f32 %v132_v9, %v132_v9 }
  0x30   : > { %v106_v16 = vld [vmem:[%s585_s22 + $0x88] sm:$0xff]  ;;  %v107_v17 = vld [vmem:[%s585_s22 + $0x90] sm:$0xff]  ;;  %v87_v18 = vld [vmem:[%s570_s21 + $0xf8] sm:$0xff]  ;;  %v137_v32 = vsub.f32 %v72_v29, %v105_v15 }
  0x31   : > { %v108_v19 = vld [vmem:[%s585_s22 + $0x98] sm:$0xff]  ;;  %v109_v20 = vld [vmem:[%s585_s22 + $0xa0] sm:$0xff]  ;;  %v110_v28 = vld [vmem:[%s585_s22 + $0xa8] sm:$0xff]  ;;  %v138_v33 = vsub.f32 %v73_v30, %v106_v16  ;;  %v139_v34 = vsub.f32 %v74_v31, %v107_v17  ;;  %v159_v30 = vmul.f32 %v127_v46, %v127_v46  ;;  %v160_v17 = vmul.f32 %v128_v54, %v128_v54 }
  0x32   : > { %v111_v36 = vld [vmem:[%s585_s22 + $0xb0] sm:$0xff]  ;;  %v112_v41 = vld [vmem:[%s585_s22 + $0xb8] sm:$0xff]  ;;  %v113_v22 = vld [vmem:[%s585_s22 + $0xc0] sm:$0xff]  ;;  %v140_v23 = vsub.f32 %v75_v38, %v108_v19  ;;  %v141_v24 = vsub.f32 %v76_v39, %v109_v20  ;;  %v142_v37 = vsub.f32 %v77_v40, %v110_v28  ;;  %v161_v19 = vmul.f32 %v129_v55, %v129_v55 }
  0x33   : > { %v114_v43 = vld [vmem:[%s585_s22 + $0xc8] sm:$0xff]  ;;  %v115_v51 = vld [vmem:[%s585_s22 + $0xd0] sm:$0xff]  ;;  %v116_v52 = vld [vmem:[%s585_s22 + $0xd8] sm:$0xff]  ;;  %v143_v53 = vsub.f32 %v78_v48, %v111_v36  ;;  %v144_v61 = vsub.f32 %v79_v49, %v112_v41  ;;  %v145_v29 = vsub.f32 %v80_v50, %v113_v22  ;;  %v162_v20 = vmul.f32 %v130_v56, %v130_v56 }
  0x34   : > { %v117_v31 = vld [vmem:[%s585_s22 + $0xe0] sm:$0xff]  ;;  %v118_v62 = vld [vmem:[%s585_s22 + $0xe8] sm:$0xff]  ;;  %v119_v44 = vld [vmem:[%s585_s22 + $0xf0] sm:$0xff]  ;;  %v146_v63 = vsub.f32 %v81_v58, %v114_v43  ;;  %v147_v15 = vsub.f32 %v82_v59, %v115_v51  ;;  %v148_v16 = vsub.f32 %v83_v60, %v116_v52  ;;  %v163_v28 = vmul.f32 %v131_v8, %v131_v8 }
  0x35   : > { %v120_v0 = vld [vmem:[%s585_s22 + $0xf8] sm:$0xff]  ;;  %v149_v38 = vsub.f32 %v84_v12, %v117_v31  ;;  %v150_v39 = vsub.f32 %v85_v13, %v118_v62  ;;  %v151_v40 = vsub.f32 %v86_v14, %v119_v44  ;;  %v165_v48 = vmul.f32 %v133_v10, %v133_v10 }
  0x36   : > { %v152_v45 = vsub.f32 %v87_v18, %v120_v0  ;;  %v166_v49 = vmul.f32 %v134_v21, %v134_v21  ;;  %v167_v50 = vmul.f32 %v135_v25, %v135_v25  ;;  %v168_v46 = vmul.f32 %v136_v26, %v136_v26 }
  0x37   : > { %v169_v36 = vmul.f32 %v137_v32, %v137_v32  ;;  %v170_v41 = vmul.f32 %v138_v33, %v138_v33  ;;  %v171_v22 = vmul.f32 %v139_v34, %v139_v34  ;;  %v172_v58 = vmul.f32 %v140_v23, %v140_v23 }
  0x38   : > { %v173_v59 = vmul.f32 %v141_v24, %v141_v24  ;;  %v174_v60 = vmul.f32 %v142_v37, %v142_v37  ;;  %v175_v54 = vmul.f32 %v143_v53, %v143_v53  ;;  %v176_v43 = vmul.f32 %v144_v61, %v144_v61 }
  0x39   : > { %v177_v12 = vmul.f32 %v145_v29, %v145_v29  ;;  %v178_v13 = vmul.f32 %v146_v63, %v146_v63  ;;  %v179_v14 = vmul.f32 %v147_v15, %v147_v15  ;;  %v180_v55 = vmul.f32 %v148_v16, %v148_v16 }
  0x3a   : > { %v181_v0 = vmul.f32 %v149_v38, %v149_v38  ;;  %v182_v56 = vmul.f32 %v150_v39, %v150_v39  ;;  %v183_v8 = vmul.f32 %v151_v40, %v151_v40  ;;  %v184_v9 = vmul.f32 %v152_v45, %v152_v45  ;;  %v686_v39 = vld [vmem:[#allocation11_spill] sm:$0xff] }
  0x3b   : > { %v185_v10 = vadd.f32 %v161_v19, %v606_v47  ;;  %v188_v21 = vadd.f32 %v162_v20, %v614_v57  ;;  %v191_v25 = vadd.f32 %v163_v28, %v622_v11  ;;  %v194_v26 = vadd.f32 %v164_v1, %v156_v27 }
  0x3c   : > { %v197_v18 = vadd.f32 %v165_v48, %v157_v35  ;;  %v200_v32 = vadd.f32 %v166_v49, %v158_v42  ;;  %v203_v33 = vadd.f32 %v167_v50, %v159_v30  ;;  %v206_v34 = vadd.f32 %v168_v46, %v160_v17  ;;  %v685_v17 = vld [vmem:[#allocation12_spill] sm:$0xff] }
  0x3d   : > { %v186_v23 = vadd.f32 %v185_v10, %v169_v36  ;;  %v189_v24 = vadd.f32 %v188_v21, %v170_v41  ;;  %v192_v37 = vadd.f32 %v191_v25, %v171_v22  ;;  %v195_v51 = vadd.f32 %v194_v26, %v172_v58 }
  0x3e   : > { %v198_v52 = vadd.f32 %v197_v18, %v173_v59  ;;  %v201_v53 = vadd.f32 %v200_v32, %v174_v60  ;;  %v204_v61 = vadd.f32 %v203_v33, %v175_v54  ;;  %v207_v29 = vadd.f32 %v206_v34, %v176_v43 }
  0x3f   : > { %v187_v31 = vadd.f32 %v186_v23, %v177_v12  ;;  %v190_v62 = vadd.f32 %v189_v24, %v178_v13  ;;  %v193_v47 = vadd.f32 %v192_v37, %v179_v14  ;;  %v196_v44 = vadd.f32 %v195_v51, %v180_v55 }
  0x40   : > { %v199_v57 = vadd.f32 %v198_v52, %v181_v0  ;;  %v202_v63 = vadd.f32 %v201_v53, %v182_v56  ;;  %v205_v11 = vadd.f32 %v204_v61, %v183_v8  ;;  %v208_v1 = vadd.f32 %v207_v29, %v184_v9  ;;  %44 = sbr.rel (!%p42_p10) target bundleno = 30 (0x1e), region = 45 }
  0x41   : > { %v209_v27 = vadd.f32 %v486_v7, %v187_v31   ;;  %v210_v35 = vadd.f32 %v482_v6, %v190_v62   ;;  %v211_v42 = vadd.f32 %v478_v5, %v193_v47   ;;  %v212_v30 = vadd.f32 %v474_v4, %v196_v44  }
  0x42   : > { %v213_v15 = vadd.f32 %v470_v3, %v199_v57   ;;  %v214_v16 = vadd.f32 %v466_v2, %v202_v63   ;;  %v215_v38 = vadd.f32 %v685_v17, %v205_v11   ;;  %v216_v40 = vadd.f32 %v686_v39, %v208_v1  }
  0x43   : > { %v691_v4 = vmov %v212_v30  ;;  %v692_v5 = vmov %v211_v42  ;;  %v693_v6 = vmov %v210_v35  ;;  %v694_v7 = vmov %v209_v27  ;;  %217 = vst [vmem:[#allocation7] sm:$0xff] (%p42_p10), %v209_v27  ;;  %218 = vst [vmem:[#allocation7 + $0x8] sm:$0xff] (%p42_p10), %v210_v35 }
  0x44   : > { %v687_v0 = vmov %v216_v40  ;;  %v688_v1 = vmov %v215_v38  ;;  %v689_v2 = vmov %v214_v16  ;;  %v690_v3 = vmov %v213_v15  ;;  %219 = vst [vmem:[#allocation7 + $0x10] sm:$0xff] (%p42_p10), %v211_v42  ;;  %220 = vst [vmem:[#allocation7 + $0x18] sm:$0xff] (%p42_p10), %v212_v30 }
  0x45   :  { %221 = vst [vmem:[#allocation7 + $0x20] sm:$0xff] %v213_v15  ;;  %222 = vst [vmem:[#allocation7 + $0x28] sm:$0xff] %v214_v16 }
  0x46   :  { %223 = vst [vmem:[#allocation7 + $0x30] sm:$0xff] %v215_v38  ;;  %224 = vst [vmem:[#allocation7 + $0x38] sm:$0xff] %v216_v40 }
  0x47   :  { %405 = shalt.err (!%p402_p1)
}
  0x48   :  { %236 = dma.vmem_to_hbm [thread:$0]  %s231_s24, 1024, %s682_s2, [#allocation4], %s493_s12, %s493_s12, %s494_s13  }
  0x49   :  { %454 = dma.done.wait [#allocation4], 1024  }
  0x4a   :  { %455 = vsyncadd [#allocation4], 4294966272 }
  0x4b   :  { %240 = vsyncpa [#allocation3], 1 }
  0x4c   :  { %241 = vsyncpa [#allocation6], 1 }
  0x4d   :  { %242 = vsyncpa [#allocation4], 1 }

</bundles_post_ra>
